<compile_context>
chip_gen: v7x
topology: tpu7x:2x2x1
jax: 0.10.0
libtpu: 0.0.40
codegen_flags: <defaults>
</compile_context>

<pallas_src>
import jax
import jax.numpy as jnp
from jax.experimental import pallas as pl
from jax.experimental.pallas import tpu as pltpu

# ---- module hyperparameters (from PredictionModel.py) ----
HIDDEN_SIZE = 5
INPUT_SIZE = 8
NUM_CLASSES = 1
NUM_LAYERS = 1
SEQ_LENGTH = 8
BATCH = 2
FC1_OUT = 100

GATES = 4 * HIDDEN_SIZE                 # 20 (gate order i, f, o, g)

# ---- row layout of the single packed parameter operand (PACK_ROWS x 128) ----
ROW_WX = 0                              # rows [0:I]       : Wx
ROW_BIAS = INPUT_SIZE                   # row  [I]         : b_ih + b_hh (fused)
ROW_WH = INPUT_SIZE + 1                 # rows [I+1:I+1+H] : Wh
ROW_FC1 = ROW_WH + HIDDEN_SIZE          # rows [..:..+H]   : W1
ROW_B1 = ROW_FC1 + HIDDEN_SIZE          # row              : b1
ROW_W2 = ROW_B1 + 1                     # row              : W2^T
ROW_B2 = ROW_W2 + 1                     # row              : b2 (lane 0)
PACK_ROWS = 24                          # 22 used, padded to 3 sublane tiles
PACK_LANES = 128


def prediction_kernel(x_ref, p_ref, out_ref):
    """Whole forward pass in one gridless kernel (tiny, latency-bound shapes).

    x_ref  : (T*B, I+1)  time-major flattened input, last column == 1.0
    p_ref  : (24, 128)   packed parameters (see ROW_* layout above)
    out_ref: (B, num_classes)
    """
    H = HIDDEN_SIZE
    T = SEQ_LENGTH
    G = GATES
    B = x_ref.shape[0] // T

    # One fused input-side projection for ALL timesteps; bias folded in via the
    # ones column of x and the bias row of the packed Wx (single MXU push, no +b).
    wx_aug = p_ref[ROW_WX:ROW_BIAS + 1, 0:G]                                  # (I+1, G)
    xproj = jnp.dot(x_ref[...], wx_aug, preferred_element_type=jnp.float32)   # (T*B, G)

    # Loop-invariant recurrent-weight row broadcasts, hoisted out of the loop
    # (JAX does not CSE broadcast_in_dim).
    wh_rows = [
        jnp.broadcast_to(p_ref[ROW_WH + k:ROW_WH + k + 1, 0:G], (B, G))
        for k in range(H)
    ]

    h = jnp.zeros((B, H), jnp.float32)   # h_0
    c = jnp.zeros((B, H), jnp.float32)   # c_0

    # Static unroll over time (T known at trace time).
    # TODO(synk): optionally compute the t=0 rows of xproj with a VPU FMA to hide
    # the MXU push latency -- needs bundle-dump verification before committing.
    for t in range(T):
        z = xproj[t * B:(t + 1) * B, :]                  # (B, G) leading-axis slice
        # Recurrent h @ Wh as VPU broadcast-FMAs (K = H = 5), combined with a
        # balanced add tree (depth 3) instead of a serial depth-5 chain.
        terms = [z] + [h[:, k:k + 1] * wh_rows[k] for k in range(H)]
        while len(terms) > 1:
            nxt = [terms[i] + terms[i + 1] for i in range(0, len(terms) - 1, 2)]
            if len(terms) % 2:
                nxt.append(terms[-1])
            terms = nxt
        z = terms[0]

        sig = jax.nn.sigmoid(z)                          # i|f|o slabs (g lanes unused)
        g_g = jnp.tanh(z[:, 3 * H:4 * H])                # g slab
        i_g = sig[:, 0:H]
        f_g = sig[:, H:2 * H]
        o_g = sig[:, 2 * H:3 * H]

        c = f_g * c + i_g * g_g
        h = o_g * jnp.tanh(c)

    # hn.view(-1, hidden) == h (num_layers == 1); then relu -> fc_1 -> relu -> fc
    w1 = p_ref[ROW_FC1:ROW_FC1 + H, 0:FC1_OUT]           # (H, 100) free ref view
    b1 = p_ref[ROW_B1:ROW_B1 + 1, 0:FC1_OUT]             # (1, 100)
    y = jnp.maximum(h, 0.0)
    y = jnp.maximum(jnp.dot(y, w1, preferred_element_type=jnp.float32) + b1, 0.0)  # (B, 100)

    # Final FC(100 -> 1) as a lane multiply-reduce (no 1-lane MXU dot).
    w2t = p_ref[ROW_W2:ROW_W2 + 1, 0:FC1_OUT]            # (1, 100)
    b2 = p_ref[ROW_B2:ROW_B2 + 1, 0:NUM_CLASSES]         # (1, 1)
    out = jnp.sum(y * w2t, axis=-1, keepdims=True) + b2  # (B, 1)
    out_ref[...] = out.astype(out_ref.dtype)


def _prediction_forward(x, params_pack):
    B, T, I = x.shape
    # Time-major flatten + ones column (folds the LSTM input bias into the
    # in-kernel matmul). Under jit this shares one dispatch with the pallas call.
    x_tm = jnp.transpose(x, (1, 0, 2)).reshape(T * B, I)
    x_aug = jnp.concatenate([x_tm, jnp.ones((T * B, 1), x_tm.dtype)], axis=1)  # (T*B, I+1)
    return pl.pallas_call(
        prediction_kernel,
        out_shape=jax.ShapeDtypeStruct((B, NUM_CLASSES), jnp.float32),
        in_specs=[pl.BlockSpec(memory_space=pltpu.MemorySpace.VMEM)] * 2,
        out_specs=pl.BlockSpec(memory_space=pltpu.MemorySpace.VMEM),
    )(x_aug, params_pack)


prediction_forward = jax.jit(_prediction_forward)


def init_params(key):
    """Deterministic init mimicking PyTorch default uniform ranges (gate order i,f,g,o)."""
    ks = jax.random.split(key, 8)
    k_lstm = 1.0 / jnp.sqrt(HIDDEN_SIZE)
    wx = jax.random.uniform(ks[0], (4, INPUT_SIZE, HIDDEN_SIZE), jnp.float32, -k_lstm, k_lstm)
    wh = jax.random.uniform(ks[1], (4, HIDDEN_SIZE, HIDDEN_SIZE), jnp.float32, -k_lstm, k_lstm)
    b_ih = jax.random.uniform(ks[2], (4, 1, HIDDEN_SIZE), jnp.float32, -k_lstm, k_lstm)
    b_hh = jax.random.uniform(ks[3], (4, 1, HIDDEN_SIZE), jnp.float32, -k_lstm, k_lstm)
    b = b_ih + b_hh

    k1 = 1.0 / jnp.sqrt(HIDDEN_SIZE)
    w1 = jax.random.uniform(ks[4], (HIDDEN_SIZE, FC1_OUT), jnp.float32, -k1, k1)
    b1 = jax.random.uniform(ks[5], (1, FC1_OUT), jnp.float32, -k1, k1)

    k2 = 1.0 / jnp.sqrt(FC1_OUT)
    w2 = jax.random.uniform(ks[6], (FC1_OUT, NUM_CLASSES), jnp.float32, -k2, k2)
    b2 = jax.random.uniform(ks[7], (1, NUM_CLASSES), jnp.float32, -k2, k2)
    return (wx, wh, b, w1, b1, w2, b2)


def pack_params(raw):
    """Fuse all 8 small parameter tensors into ONE lane-padded kernel operand."""
    wx, wh, b, w1, b1, w2, b2 = raw
    # Reorder gates (i, f, g, o) -> (i, f, o, g): sigmoid gates contiguous, tanh last.
    order = (0, 1, 3, 2)
    wx_cat = jnp.concatenate([wx[i] for i in order], axis=1)       # (I, 4H)
    wh_cat = jnp.concatenate([wh[i] for i in order], axis=1)       # (H, 4H)
    b_cat = jnp.concatenate([b[i] for i in order], axis=1)         # (1, 4H)

    p = jnp.zeros((PACK_ROWS, PACK_LANES), jnp.float32)
    p = p.at[ROW_WX:ROW_WX + INPUT_SIZE, 0:GATES].set(wx_cat)
    p = p.at[ROW_BIAS:ROW_BIAS + 1, 0:GATES].set(b_cat)
    p = p.at[ROW_WH:ROW_WH + HIDDEN_SIZE, 0:GATES].set(wh_cat)
    p = p.at[ROW_FC1:ROW_FC1 + HIDDEN_SIZE, 0:FC1_OUT].set(w1)
    p = p.at[ROW_B1:ROW_B1 + 1, 0:FC1_OUT].set(b1)
    p = p.at[ROW_W2:ROW_W2 + 1, 0:FC1_OUT].set(w2.T)
    p = p.at[ROW_B2:ROW_B2 + 1, 0:NUM_CLASSES].set(b2)
    return p


def prediction_reference(x, raw):
    """Pure-JAX reference matching the PyTorch forward semantics (gate order i,f,g,o)."""
    wx, wh, b, w1, b1, w2, b2 = raw
    B, T, _ = x.shape
    h = jnp.zeros((B, HIDDEN_SIZE), jnp.float32)
    c = jnp.zeros((B, HIDDEN_SIZE), jnp.float32)
    for t in range(T):
        xt = x[:, t, :]
        zi = xt @ wx[0] + h @ wh[0] + b[0]
        zf = xt @ wx[1] + h @ wh[1] + b[1]
        zg = xt @ wx[2] + h @ wh[2] + b[2]
        zo = xt @ wx[3] + h @ wh[3] + b[3]
        i_g, f_g = jax.nn.sigmoid(zi), jax.nn.sigmoid(zf)
        g_g, o_g = jnp.tanh(zg), jax.nn.sigmoid(zo)
        c = f_g * c + i_g * g_g
        h = o_g * jnp.tanh(c)
    out = jnp.maximum(h, 0.0)
    out = jnp.maximum(out @ w1 + b1, 0.0)
    return out @ w2 + b2


if __name__ == "__main__":
    key = jax.random.PRNGKey(0)
    kx, kp = jax.random.split(key)
    x = jax.random.normal(kx, (BATCH, SEQ_LENGTH, INPUT_SIZE), jnp.float32)
    raw = init_params(kp)
    params_pack = pack_params(raw)

    out = prediction_forward(x, params_pack)
    out = jax.block_until_ready(out)

    ref = prediction_reference(x, raw)
    assert out.shape == (BATCH, NUM_CLASSES)
    assert jnp.allclose(out, ref, atol=1e-4, rtol=1e-4), (out, ref)
    print("KERNEL_OK")
</pallas_src>

<mosaic_0001>
module attributes {stable_mosaic.version = 11 : i64} {
  func.func @prediction_kernel(%arg0: memref<16x9xf32, #tpu.memory_space<vmem>>, %arg1: memref<24x128xf32, #tpu.memory_space<vmem>>, %arg2: memref<2x1xf32, #tpu.memory_space<vmem>>) attributes {dimension_semantics = [], scalar_prefetch = 0 : i64, scratch_operands = 0 : i64, tpu.core_type = #tpu.core_type<tc>} {
    %c0 = arith.constant 0 : index
    %c0_0 = arith.constant 0 : index
    %0 = vector.load %arg1[%c0, %c0_0] : memref<24x128xf32, #tpu.memory_space<vmem>>, vector<9x20xf32>
    %c0_1 = arith.constant 0 : index
    %c0_2 = arith.constant 0 : index
    %1 = vector.load %arg0[%c0_1, %c0_2] : memref<16x9xf32, #tpu.memory_space<vmem>>, vector<16x9xf32>
    %cst = arith.constant dense<0.000000e+00> : vector<16x20xf32>
    %2 = tpu.matmul %1, %0, %cst {dimension_numbers = #tpu.dot_dimension_numbers<[1], [0], [0], [1], [0, 0, 1, 1], [], []>} : vector<16x9xf32>, vector<9x20xf32>, vector<16x20xf32> -> vector<16x20xf32>
    %c9 = arith.constant 9 : index
    %c0_3 = arith.constant 0 : index
    %3 = vector.load %arg1[%c9, %c0_3] : memref<24x128xf32, #tpu.memory_space<vmem>>, vector<1x20xf32>
    %4 = vector.shape_cast %3 : vector<1x20xf32> to vector<1x20xf32>
    %5 = vector.broadcast %4 : vector<1x20xf32> to vector<2x20xf32>
    %c10 = arith.constant 10 : index
    %c0_4 = arith.constant 0 : index
    %6 = vector.load %arg1[%c10, %c0_4] : memref<24x128xf32, #tpu.memory_space<vmem>>, vector<1x20xf32>
    %7 = vector.shape_cast %6 : vector<1x20xf32> to vector<1x20xf32>
    %8 = vector.broadcast %7 : vector<1x20xf32> to vector<2x20xf32>
    %c11 = arith.constant 11 : index
    %c0_5 = arith.constant 0 : index
    %9 = vector.load %arg1[%c11, %c0_5] : memref<24x128xf32, #tpu.memory_space<vmem>>, vector<1x20xf32>
    %10 = vector.shape_cast %9 : vector<1x20xf32> to vector<1x20xf32>
    %11 = vector.broadcast %10 : vector<1x20xf32> to vector<2x20xf32>
    %c12 = arith.constant 12 : index
    %c0_6 = arith.constant 0 : index
    %12 = vector.load %arg1[%c12, %c0_6] : memref<24x128xf32, #tpu.memory_space<vmem>>, vector<1x20xf32>
    %13 = vector.shape_cast %12 : vector<1x20xf32> to vector<1x20xf32>
    %14 = vector.broadcast %13 : vector<1x20xf32> to vector<2x20xf32>
    %c13 = arith.constant 13 : index
    %c0_7 = arith.constant 0 : index
    %15 = vector.load %arg1[%c13, %c0_7] : memref<24x128xf32, #tpu.memory_space<vmem>>, vector<1x20xf32>
    %16 = vector.shape_cast %15 : vector<1x20xf32> to vector<1x20xf32>
    %17 = vector.broadcast %16 : vector<1x20xf32> to vector<2x20xf32>
    %cst_8 = arith.constant 0.000000e+00 : f32
    %18 = vector.broadcast %cst_8 : f32 to vector<2x5xf32>
    %cst_9 = arith.constant 0.000000e+00 : f32
    %19 = vector.broadcast %cst_9 : f32 to vector<2x5xf32>
    %20 = vector.extract_strided_slice %2 {offsets = [0, 0], sizes = [2, 20], strides = [1, 1]} : vector<16x20xf32> to vector<2x20xf32>
    %21 = vector.extract_strided_slice %18 {offsets = [0, 0], sizes = [2, 1], strides = [1, 1]} : vector<2x5xf32> to vector<2x1xf32>
    %22 = vector.broadcast %21 : vector<2x1xf32> to vector<2x20xf32>
    %23 = arith.mulf %22, %5 : vector<2x20xf32>
    %24 = vector.extract_strided_slice %18 {offsets = [0, 1], sizes = [2, 1], strides = [1, 1]} : vector<2x5xf32> to vector<2x1xf32>
    %25 = vector.broadcast %24 : vector<2x1xf32> to vector<2x20xf32>
    %26 = arith.mulf %25, %8 : vector<2x20xf32>
    %27 = vector.extract_strided_slice %18 {offsets = [0, 2], sizes = [2, 1], strides = [1, 1]} : vector<2x5xf32> to vector<2x1xf32>
    %28 = vector.broadcast %27 : vector<2x1xf32> to vector<2x20xf32>
    %29 = arith.mulf %28, %11 : vector<2x20xf32>
    %30 = vector.extract_strided_slice %18 {offsets = [0, 3], sizes = [2, 1], strides = [1, 1]} : vector<2x5xf32> to vector<2x1xf32>
    %31 = vector.broadcast %30 : vector<2x1xf32> to vector<2x20xf32>
    %32 = arith.mulf %31, %14 : vector<2x20xf32>
    %33 = vector.extract_strided_slice %18 {offsets = [0, 4], sizes = [2, 1], strides = [1, 1]} : vector<2x5xf32> to vector<2x1xf32>
    %34 = vector.broadcast %33 : vector<2x1xf32> to vector<2x20xf32>
    %35 = arith.mulf %34, %17 : vector<2x20xf32>
    %36 = arith.addf %20, %23 : vector<2x20xf32>
    %37 = arith.addf %26, %29 : vector<2x20xf32>
    %38 = arith.addf %32, %35 : vector<2x20xf32>
    %39 = arith.addf %36, %37 : vector<2x20xf32>
    %40 = arith.addf %39, %38 : vector<2x20xf32>
    %41 = arith.negf %40 : vector<2x20xf32>
    %42 = math.exp %41 : vector<2x20xf32>
    %cst_10 = arith.constant 1.000000e+00 : f32
    %43 = vector.broadcast %cst_10 : f32 to vector<2x20xf32>
    %44 = arith.addf %43, %42 : vector<2x20xf32>
    %45 = arith.divf %43, %44 : vector<2x20xf32>
    %46 = vector.extract_strided_slice %40 {offsets = [0, 15], sizes = [2, 5], strides = [1, 1]} : vector<2x20xf32> to vector<2x5xf32>
    %47 = math.tanh %46 : vector<2x5xf32>
    %48 = vector.extract_strided_slice %45 {offsets = [0, 0], sizes = [2, 5], strides = [1, 1]} : vector<2x20xf32> to vector<2x5xf32>
    %49 = vector.extract_strided_slice %45 {offsets = [0, 5], sizes = [2, 5], strides = [1, 1]} : vector<2x20xf32> to vector<2x5xf32>
    %50 = vector.extract_strided_slice %45 {offsets = [0, 10], sizes = [2, 5], strides = [1, 1]} : vector<2x20xf32> to vector<2x5xf32>
    %51 = arith.mulf %49, %19 : vector<2x5xf32>
    %52 = arith.mulf %48, %47 : vector<2x5xf32>
    %53 = arith.addf %51, %52 : vector<2x5xf32>
    %54 = math.tanh %53 : vector<2x5xf32>
    %55 = arith.mulf %50, %54 : vector<2x5xf32>
    %56 = vector.extract_strided_slice %2 {offsets = [2, 0], sizes = [2, 20], strides = [1, 1]} : vector<16x20xf32> to vector<2x20xf32>
    %57 = vector.extract_strided_slice %55 {offsets = [0, 0], sizes = [2, 1], strides = [1, 1]} : vector<2x5xf32> to vector<2x1xf32>
    %58 = vector.broadcast %57 : vector<2x1xf32> to vector<2x20xf32>
    %59 = arith.mulf %58, %5 : vector<2x20xf32>
    %60 = vector.extract_strided_slice %55 {offsets = [0, 1], sizes = [2, 1], strides = [1, 1]} : vector<2x5xf32> to vector<2x1xf32>
    %61 = vector.broadcast %60 : vector<2x1xf32> to vector<2x20xf32>
    %62 = arith.mulf %61, %8 : vector<2x20xf32>
    %63 = vector.extract_strided_slice %55 {offsets = [0, 2], sizes = [2, 1], strides = [1, 1]} : vector<2x5xf32> to vector<2x1xf32>
    %64 = vector.broadcast %63 : vector<2x1xf32> to vector<2x20xf32>
    %65 = arith.mulf %64, %11 : vector<2x20xf32>
    %66 = vector.extract_strided_slice %55 {offsets = [0, 3], sizes = [2, 1], strides = [1, 1]} : vector<2x5xf32> to vector<2x1xf32>
    %67 = vector.broadcast %66 : vector<2x1xf32> to vector<2x20xf32>
    %68 = arith.mulf %67, %14 : vector<2x20xf32>
    %69 = vector.extract_strided_slice %55 {offsets = [0, 4], sizes = [2, 1], strides = [1, 1]} : vector<2x5xf32> to vector<2x1xf32>
    %70 = vector.broadcast %69 : vector<2x1xf32> to vector<2x20xf32>
    %71 = arith.mulf %70, %17 : vector<2x20xf32>
    %72 = arith.addf %56, %59 : vector<2x20xf32>
    %73 = arith.addf %62, %65 : vector<2x20xf32>
    %74 = arith.addf %68, %71 : vector<2x20xf32>
    %75 = arith.addf %72, %73 : vector<2x20xf32>
    %76 = arith.addf %75, %74 : vector<2x20xf32>
    %77 = arith.negf %76 : vector<2x20xf32>
    %78 = math.exp %77 : vector<2x20xf32>
    %cst_11 = arith.constant 1.000000e+00 : f32
    %79 = vector.broadcast %cst_11 : f32 to vector<2x20xf32>
    %80 = arith.addf %79, %78 : vector<2x20xf32>
    %81 = arith.divf %79, %80 : vector<2x20xf32>
    %82 = vector.extract_strided_slice %76 {offsets = [0, 15], sizes = [2, 5], strides = [1, 1]} : vector<2x20xf32> to vector<2x5xf32>
    %83 = math.tanh %82 : vector<2x5xf32>
    %84 = vector.extract_strided_slice %81 {offsets = [0, 0], sizes = [2, 5], strides = [1, 1]} : vector<2x20xf32> to vector<2x5xf32>
    %85 = vector.extract_strided_slice %81 {offsets = [0, 5], sizes = [2, 5], strides = [1, 1]} : vector<2x20xf32> to vector<2x5xf32>
    %86 = vector.extract_strided_slice %81 {offsets = [0, 10], sizes = [2, 5], strides = [1, 1]} : vector<2x20xf32> to vector<2x5xf32>
    %87 = arith.mulf %85, %53 : vector<2x5xf32>
    %88 = arith.mulf %84, %83 : vector<2x5xf32>
    %89 = arith.addf %87, %88 : vector<2x5xf32>
    %90 = math.tanh %89 : vector<2x5xf32>
    %91 = arith.mulf %86, %90 : vector<2x5xf32>
    %92 = vector.extract_strided_slice %2 {offsets = [4, 0], sizes = [2, 20], strides = [1, 1]} : vector<16x20xf32> to vector<2x20xf32>
    %93 = vector.extract_strided_slice %91 {offsets = [0, 0], sizes = [2, 1], strides = [1, 1]} : vector<2x5xf32> to vector<2x1xf32>
    %94 = vector.broadcast %93 : vector<2x1xf32> to vector<2x20xf32>
    %95 = arith.mulf %94, %5 : vector<2x20xf32>
    %96 = vector.extract_strided_slice %91 {offsets = [0, 1], sizes = [2, 1], strides = [1, 1]} : vector<2x5xf32> to vector<2x1xf32>
    %97 = vector.broadcast %96 : vector<2x1xf32> to vector<2x20xf32>
    %98 = arith.mulf %97, %8 : vector<2x20xf32>
    %99 = vector.extract_strided_slice %91 {offsets = [0, 2], sizes = [2, 1], strides = [1, 1]} : vector<2x5xf32> to vector<2x1xf32>
    %100 = vector.broadcast %99 : vector<2x1xf32> to vector<2x20xf32>
    %101 = arith.mulf %100, %11 : vector<2x20xf32>
    %102 = vector.extract_strided_slice %91 {offsets = [0, 3], sizes = [2, 1], strides = [1, 1]} : vector<2x5xf32> to vector<2x1xf32>
    %103 = vector.broadcast %102 : vector<2x1xf32> to vector<2x20xf32>
    %104 = arith.mulf %103, %14 : vector<2x20xf32>
    %105 = vector.extract_strided_slice %91 {offsets = [0, 4], sizes = [2, 1], strides = [1, 1]} : vector<2x5xf32> to vector<2x1xf32>
    %106 = vector.broadcast %105 : vector<2x1xf32> to vector<2x20xf32>
    %107 = arith.mulf %106, %17 : vector<2x20xf32>
    %108 = arith.addf %92, %95 : vector<2x20xf32>
    %109 = arith.addf %98, %101 : vector<2x20xf32>
    %110 = arith.addf %104, %107 : vector<2x20xf32>
    %111 = arith.addf %108, %109 : vector<2x20xf32>
    %112 = arith.addf %111, %110 : vector<2x20xf32>
    %113 = arith.negf %112 : vector<2x20xf32>
    %114 = math.exp %113 : vector<2x20xf32>
    %cst_12 = arith.constant 1.000000e+00 : f32
    %115 = vector.broadcast %cst_12 : f32 to vector<2x20xf32>
    %116 = arith.addf %115, %114 : vector<2x20xf32>
    %117 = arith.divf %115, %116 : vector<2x20xf32>
    %118 = vector.extract_strided_slice %112 {offsets = [0, 15], sizes = [2, 5], strides = [1, 1]} : vector<2x20xf32> to vector<2x5xf32>
    %119 = math.tanh %118 : vector<2x5xf32>
    %120 = vector.extract_strided_slice %117 {offsets = [0, 0], sizes = [2, 5], strides = [1, 1]} : vector<2x20xf32> to vector<2x5xf32>
    %121 = vector.extract_strided_slice %117 {offsets = [0, 5], sizes = [2, 5], strides = [1, 1]} : vector<2x20xf32> to vector<2x5xf32>
    %122 = vector.extract_strided_slice %117 {offsets = [0, 10], sizes = [2, 5], strides = [1, 1]} : vector<2x20xf32> to vector<2x5xf32>
    %123 = arith.mulf %121, %89 : vector<2x5xf32>
    %124 = arith.mulf %120, %119 : vector<2x5xf32>
    %125 = arith.addf %123, %124 : vector<2x5xf32>
    %126 = math.tanh %125 : vector<2x5xf32>
    %127 = arith.mulf %122, %126 : vector<2x5xf32>
    %128 = vector.extract_strided_slice %2 {offsets = [6, 0], sizes = [2, 20], strides = [1, 1]} : vector<16x20xf32> to vector<2x20xf32>
    %129 = vector.extract_strided_slice %127 {offsets = [0, 0], sizes = [2, 1], strides = [1, 1]} : vector<2x5xf32> to vector<2x1xf32>
    %130 = vector.broadcast %129 : vector<2x1xf32> to vector<2x20xf32>
    %131 = arith.mulf %130, %5 : vector<2x20xf32>
    %132 = vector.extract_strided_slice %127 {offsets = [0, 1], sizes = [2, 1], strides = [1, 1]} : vector<2x5xf32> to vector<2x1xf32>
    %133 = vector.broadcast %132 : vector<2x1xf32> to vector<2x20xf32>
    %134 = arith.mulf %133, %8 : vector<2x20xf32>
    %135 = vector.extract_strided_slice %127 {offsets = [0, 2], sizes = [2, 1], strides = [1, 1]} : vector<2x5xf32> to vector<2x1xf32>
    %136 = vector.broadcast %135 : vector<2x1xf32> to vector<2x20xf32>
    %137 = arith.mulf %136, %11 : vector<2x20xf32>
    %138 = vector.extract_strided_slice %127 {offsets = [0, 3], sizes = [2, 1], strides = [1, 1]} : vector<2x5xf32> to vector<2x1xf32>
    %139 = vector.broadcast %138 : vector<2x1xf32> to vector<2x20xf32>
    %140 = arith.mulf %139, %14 : vector<2x20xf32>
    %141 = vector.extract_strided_slice %127 {offsets = [0, 4], sizes = [2, 1], strides = [1, 1]} : vector<2x5xf32> to vector<2x1xf32>
    %142 = vector.broadcast %141 : vector<2x1xf32> to vector<2x20xf32>
    %143 = arith.mulf %142, %17 : vector<2x20xf32>
    %144 = arith.addf %128, %131 : vector<2x20xf32>
    %145 = arith.addf %134, %137 : vector<2x20xf32>
    %146 = arith.addf %140, %143 : vector<2x20xf32>
    %147 = arith.addf %144, %145 : vector<2x20xf32>
    %148 = arith.addf %147, %146 : vector<2x20xf32>
    %149 = arith.negf %148 : vector<2x20xf32>
    %150 = math.exp %149 : vector<2x20xf32>
    %cst_13 = arith.constant 1.000000e+00 : f32
    %151 = vector.broadcast %cst_13 : f32 to vector<2x20xf32>
    %152 = arith.addf %151, %150 : vector<2x20xf32>
    %153 = arith.divf %151, %152 : vector<2x20xf32>
    %154 = vector.extract_strided_slice %148 {offsets = [0, 15], sizes = [2, 5], strides = [1, 1]} : vector<2x20xf32> to vector<2x5xf32>
    %155 = math.tanh %154 : vector<2x5xf32>
    %156 = vector.extract_strided_slice %153 {offsets = [0, 0], sizes = [2, 5], strides = [1, 1]} : vector<2x20xf32> to vector<2x5xf32>
    %157 = vector.extract_strided_slice %153 {offsets = [0, 5], sizes = [2, 5], strides = [1, 1]} : vector<2x20xf32> to vector<2x5xf32>
    %158 = vector.extract_strided_slice %153 {offsets = [0, 10], sizes = [2, 5], strides = [1, 1]} : vector<2x20xf32> to vector<2x5xf32>
    %159 = arith.mulf %157, %125 : vector<2x5xf32>
    %160 = arith.mulf %156, %155 : vector<2x5xf32>
    %161 = arith.addf %159, %160 : vector<2x5xf32>
    %162 = math.tanh %161 : vector<2x5xf32>
    %163 = arith.mulf %158, %162 : vector<2x5xf32>
    %164 = vector.extract_strided_slice %2 {offsets = [8, 0], sizes = [2, 20], strides = [1, 1]} : vector<16x20xf32> to vector<2x20xf32>
    %165 = vector.extract_strided_slice %163 {offsets = [0, 0], sizes = [2, 1], strides = [1, 1]} : vector<2x5xf32> to vector<2x1xf32>
    %166 = vector.broadcast %165 : vector<2x1xf32> to vector<2x20xf32>
    %167 = arith.mulf %166, %5 : vector<2x20xf32>
    %168 = vector.extract_strided_slice %163 {offsets = [0, 1], sizes = [2, 1], strides = [1, 1]} : vector<2x5xf32> to vector<2x1xf32>
    %169 = vector.broadcast %168 : vector<2x1xf32> to vector<2x20xf32>
    %170 = arith.mulf %169, %8 : vector<2x20xf32>
    %171 = vector.extract_strided_slice %163 {offsets = [0, 2], sizes = [2, 1], strides = [1, 1]} : vector<2x5xf32> to vector<2x1xf32>
    %172 = vector.broadcast %171 : vector<2x1xf32> to vector<2x20xf32>
    %173 = arith.mulf %172, %11 : vector<2x20xf32>
    %174 = vector.extract_strided_slice %163 {offsets = [0, 3], sizes = [2, 1], strides = [1, 1]} : vector<2x5xf32> to vector<2x1xf32>
    %175 = vector.broadcast %174 : vector<2x1xf32> to vector<2x20xf32>
    %176 = arith.mulf %175, %14 : vector<2x20xf32>
    %177 = vector.extract_strided_slice %163 {offsets = [0, 4], sizes = [2, 1], strides = [1, 1]} : vector<2x5xf32> to vector<2x1xf32>
    %178 = vector.broadcast %177 : vector<2x1xf32> to vector<2x20xf32>
    %179 = arith.mulf %178, %17 : vector<2x20xf32>
    %180 = arith.addf %164, %167 : vector<2x20xf32>
    %181 = arith.addf %170, %173 : vector<2x20xf32>
    %182 = arith.addf %176, %179 : vector<2x20xf32>
    %183 = arith.addf %180, %181 : vector<2x20xf32>
    %184 = arith.addf %183, %182 : vector<2x20xf32>
    %185 = arith.negf %184 : vector<2x20xf32>
    %186 = math.exp %185 : vector<2x20xf32>
    %cst_14 = arith.constant 1.000000e+00 : f32
    %187 = vector.broadcast %cst_14 : f32 to vector<2x20xf32>
    %188 = arith.addf %187, %186 : vector<2x20xf32>
    %189 = arith.divf %187, %188 : vector<2x20xf32>
    %190 = vector.extract_strided_slice %184 {offsets = [0, 15], sizes = [2, 5], strides = [1, 1]} : vector<2x20xf32> to vector<2x5xf32>
    %191 = math.tanh %190 : vector<2x5xf32>
    %192 = vector.extract_strided_slice %189 {offsets = [0, 0], sizes = [2, 5], strides = [1, 1]} : vector<2x20xf32> to vector<2x5xf32>
    %193 = vector.extract_strided_slice %189 {offsets = [0, 5], sizes = [2, 5], strides = [1, 1]} : vector<2x20xf32> to vector<2x5xf32>
    %194 = vector.extract_strided_slice %189 {offsets = [0, 10], sizes = [2, 5], strides = [1, 1]} : vector<2x20xf32> to vector<2x5xf32>
    %195 = arith.mulf %193, %161 : vector<2x5xf32>
    %196 = arith.mulf %192, %191 : vector<2x5xf32>
    %197 = arith.addf %195, %196 : vector<2x5xf32>
    %198 = math.tanh %197 : vector<2x5xf32>
    %199 = arith.mulf %194, %198 : vector<2x5xf32>
    %200 = vector.extract_strided_slice %2 {offsets = [10, 0], sizes = [2, 20], strides = [1, 1]} : vector<16x20xf32> to vector<2x20xf32>
    %201 = vector.extract_strided_slice %199 {offsets = [0, 0], sizes = [2, 1], strides = [1, 1]} : vector<2x5xf32> to vector<2x1xf32>
    %202 = vector.broadcast %201 : vector<2x1xf32> to vector<2x20xf32>
    %203 = arith.mulf %202, %5 : vector<2x20xf32>
    %204 = vector.extract_strided_slice %199 {offsets = [0, 1], sizes = [2, 1], strides = [1, 1]} : vector<2x5xf32> to vector<2x1xf32>
    %205 = vector.broadcast %204 : vector<2x1xf32> to vector<2x20xf32>
    %206 = arith.mulf %205, %8 : vector<2x20xf32>
    %207 = vector.extract_strided_slice %199 {offsets = [0, 2], sizes = [2, 1], strides = [1, 1]} : vector<2x5xf32> to vector<2x1xf32>
    %208 = vector.broadcast %207 : vector<2x1xf32> to vector<2x20xf32>
    %209 = arith.mulf %208, %11 : vector<2x20xf32>
    %210 = vector.extract_strided_slice %199 {offsets = [0, 3], sizes = [2, 1], strides = [1, 1]} : vector<2x5xf32> to vector<2x1xf32>
    %211 = vector.broadcast %210 : vector<2x1xf32> to vector<2x20xf32>
    %212 = arith.mulf %211, %14 : vector<2x20xf32>
    %213 = vector.extract_strided_slice %199 {offsets = [0, 4], sizes = [2, 1], strides = [1, 1]} : vector<2x5xf32> to vector<2x1xf32>
    %214 = vector.broadcast %213 : vector<2x1xf32> to vector<2x20xf32>
    %215 = arith.mulf %214, %17 : vector<2x20xf32>
    %216 = arith.addf %200, %203 : vector<2x20xf32>
    %217 = arith.addf %206, %209 : vector<2x20xf32>
    %218 = arith.addf %212, %215 : vector<2x20xf32>
    %219 = arith.addf %216, %217 : vector<2x20xf32>
    %220 = arith.addf %219, %218 : vector<2x20xf32>
    %221 = arith.negf %220 : vector<2x20xf32>
    %222 = math.exp %221 : vector<2x20xf32>
    %cst_15 = arith.constant 1.000000e+00 : f32
    %223 = vector.broadcast %cst_15 : f32 to vector<2x20xf32>
    %224 = arith.addf %223, %222 : vector<2x20xf32>
    %225 = arith.divf %223, %224 : vector<2x20xf32>
    %226 = vector.extract_strided_slice %220 {offsets = [0, 15], sizes = [2, 5], strides = [1, 1]} : vector<2x20xf32> to vector<2x5xf32>
    %227 = math.tanh %226 : vector<2x5xf32>
    %228 = vector.extract_strided_slice %225 {offsets = [0, 0], sizes = [2, 5], strides = [1, 1]} : vector<2x20xf32> to vector<2x5xf32>
    %229 = vector.extract_strided_slice %225 {offsets = [0, 5], sizes = [2, 5], strides = [1, 1]} : vector<2x20xf32> to vector<2x5xf32>
    %230 = vector.extract_strided_slice %225 {offsets = [0, 10], sizes = [2, 5], strides = [1, 1]} : vector<2x20xf32> to vector<2x5xf32>
    %231 = arith.mulf %229, %197 : vector<2x5xf32>
    %232 = arith.mulf %228, %227 : vector<2x5xf32>
    %233 = arith.addf %231, %232 : vector<2x5xf32>
    %234 = math.tanh %233 : vector<2x5xf32>
    %235 = arith.mulf %230, %234 : vector<2x5xf32>
    %236 = vector.extract_strided_slice %2 {offsets = [12, 0], sizes = [2, 20], strides = [1, 1]} : vector<16x20xf32> to vector<2x20xf32>
    %237 = vector.extract_strided_slice %235 {offsets = [0, 0], sizes = [2, 1], strides = [1, 1]} : vector<2x5xf32> to vector<2x1xf32>
    %238 = vector.broadcast %237 : vector<2x1xf32> to vector<2x20xf32>
    %239 = arith.mulf %238, %5 : vector<2x20xf32>
    %240 = vector.extract_strided_slice %235 {offsets = [0, 1], sizes = [2, 1], strides = [1, 1]} : vector<2x5xf32> to vector<2x1xf32>
    %241 = vector.broadcast %240 : vector<2x1xf32> to vector<2x20xf32>
    %242 = arith.mulf %241, %8 : vector<2x20xf32>
    %243 = vector.extract_strided_slice %235 {offsets = [0, 2], sizes = [2, 1], strides = [1, 1]} : vector<2x5xf32> to vector<2x1xf32>
    %244 = vector.broadcast %243 : vector<2x1xf32> to vector<2x20xf32>
    %245 = arith.mulf %244, %11 : vector<2x20xf32>
    %246 = vector.extract_strided_slice %235 {offsets = [0, 3], sizes = [2, 1], strides = [1, 1]} : vector<2x5xf32> to vector<2x1xf32>
    %247 = vector.broadcast %246 : vector<2x1xf32> to vector<2x20xf32>
    %248 = arith.mulf %247, %14 : vector<2x20xf32>
    %249 = vector.extract_strided_slice %235 {offsets = [0, 4], sizes = [2, 1], strides = [1, 1]} : vector<2x5xf32> to vector<2x1xf32>
    %250 = vector.broadcast %249 : vector<2x1xf32> to vector<2x20xf32>
    %251 = arith.mulf %250, %17 : vector<2x20xf32>
    %252 = arith.addf %236, %239 : vector<2x20xf32>
    %253 = arith.addf %242, %245 : vector<2x20xf32>
    %254 = arith.addf %248, %251 : vector<2x20xf32>
    %255 = arith.addf %252, %253 : vector<2x20xf32>
    %256 = arith.addf %255, %254 : vector<2x20xf32>
    %257 = arith.negf %256 : vector<2x20xf32>
    %258 = math.exp %257 : vector<2x20xf32>
    %cst_16 = arith.constant 1.000000e+00 : f32
    %259 = vector.broadcast %cst_16 : f32 to vector<2x20xf32>
    %260 = arith.addf %259, %258 : vector<2x20xf32>
    %261 = arith.divf %259, %260 : vector<2x20xf32>
    %262 = vector.extract_strided_slice %256 {offsets = [0, 15], sizes = [2, 5], strides = [1, 1]} : vector<2x20xf32> to vector<2x5xf32>
    %263 = math.tanh %262 : vector<2x5xf32>
    %264 = vector.extract_strided_slice %261 {offsets = [0, 0], sizes = [2, 5], strides = [1, 1]} : vector<2x20xf32> to vector<2x5xf32>
    %265 = vector.extract_strided_slice %261 {offsets = [0, 5], sizes = [2, 5], strides = [1, 1]} : vector<2x20xf32> to vector<2x5xf32>
    %266 = vector.extract_strided_slice %261 {offsets = [0, 10], sizes = [2, 5], strides = [1, 1]} : vector<2x20xf32> to vector<2x5xf32>
    %267 = arith.mulf %265, %233 : vector<2x5xf32>
    %268 = arith.mulf %264, %263 : vector<2x5xf32>
    %269 = arith.addf %267, %268 : vector<2x5xf32>
    %270 = math.tanh %269 : vector<2x5xf32>
    %271 = arith.mulf %266, %270 : vector<2x5xf32>
    %272 = vector.extract_strided_slice %2 {offsets = [14, 0], sizes = [2, 20], strides = [1, 1]} : vector<16x20xf32> to vector<2x20xf32>
    %273 = vector.extract_strided_slice %271 {offsets = [0, 0], sizes = [2, 1], strides = [1, 1]} : vector<2x5xf32> to vector<2x1xf32>
    %274 = vector.broadcast %273 : vector<2x1xf32> to vector<2x20xf32>
    %275 = arith.mulf %274, %5 : vector<2x20xf32>
    %276 = vector.extract_strided_slice %271 {offsets = [0, 1], sizes = [2, 1], strides = [1, 1]} : vector<2x5xf32> to vector<2x1xf32>
    %277 = vector.broadcast %276 : vector<2x1xf32> to vector<2x20xf32>
    %278 = arith.mulf %277, %8 : vector<2x20xf32>
    %279 = vector.extract_strided_slice %271 {offsets = [0, 2], sizes = [2, 1], strides = [1, 1]} : vector<2x5xf32> to vector<2x1xf32>
    %280 = vector.broadcast %279 : vector<2x1xf32> to vector<2x20xf32>
    %281 = arith.mulf %280, %11 : vector<2x20xf32>
    %282 = vector.extract_strided_slice %271 {offsets = [0, 3], sizes = [2, 1], strides = [1, 1]} : vector<2x5xf32> to vector<2x1xf32>
    %283 = vector.broadcast %282 : vector<2x1xf32> to vector<2x20xf32>
    %284 = arith.mulf %283, %14 : vector<2x20xf32>
    %285 = vector.extract_strided_slice %271 {offsets = [0, 4], sizes = [2, 1], strides = [1, 1]} : vector<2x5xf32> to vector<2x1xf32>
    %286 = vector.broadcast %285 : vector<2x1xf32> to vector<2x20xf32>
    %287 = arith.mulf %286, %17 : vector<2x20xf32>
    %288 = arith.addf %272, %275 : vector<2x20xf32>
    %289 = arith.addf %278, %281 : vector<2x20xf32>
    %290 = arith.addf %284, %287 : vector<2x20xf32>
    %291 = arith.addf %288, %289 : vector<2x20xf32>
    %292 = arith.addf %291, %290 : vector<2x20xf32>
    %293 = arith.negf %292 : vector<2x20xf32>
    %294 = math.exp %293 : vector<2x20xf32>
    %cst_17 = arith.constant 1.000000e+00 : f32
    %295 = vector.broadcast %cst_17 : f32 to vector<2x20xf32>
    %296 = arith.addf %295, %294 : vector<2x20xf32>
    %297 = arith.divf %295, %296 : vector<2x20xf32>
    %298 = vector.extract_strided_slice %292 {offsets = [0, 15], sizes = [2, 5], strides = [1, 1]} : vector<2x20xf32> to vector<2x5xf32>
    %299 = math.tanh %298 : vector<2x5xf32>
    %300 = vector.extract_strided_slice %297 {offsets = [0, 0], sizes = [2, 5], strides = [1, 1]} : vector<2x20xf32> to vector<2x5xf32>
    %301 = vector.extract_strided_slice %297 {offsets = [0, 5], sizes = [2, 5], strides = [1, 1]} : vector<2x20xf32> to vector<2x5xf32>
    %302 = vector.extract_strided_slice %297 {offsets = [0, 10], sizes = [2, 5], strides = [1, 1]} : vector<2x20xf32> to vector<2x5xf32>
    %303 = arith.mulf %301, %269 : vector<2x5xf32>
    %304 = arith.mulf %300, %299 : vector<2x5xf32>
    %305 = arith.addf %303, %304 : vector<2x5xf32>
    %306 = math.tanh %305 : vector<2x5xf32>
    %307 = arith.mulf %302, %306 : vector<2x5xf32>
    %c14 = arith.constant 14 : index
    %c0_18 = arith.constant 0 : index
    %308 = vector.load %arg1[%c14, %c0_18] : memref<24x128xf32, #tpu.memory_space<vmem>>, vector<5x100xf32>
    %c19 = arith.constant 19 : index
    %c0_19 = arith.constant 0 : index
    %309 = vector.load %arg1[%c19, %c0_19] : memref<24x128xf32, #tpu.memory_space<vmem>>, vector<1x100xf32>
    %cst_20 = arith.constant 0.000000e+00 : f32
    %310 = vector.broadcast %cst_20 : f32 to vector<2x5xf32>
    %311 = arith.maximumf %307, %310 : vector<2x5xf32>
    %cst_21 = arith.constant dense<0.000000e+00> : vector<2x100xf32>
    %312 = tpu.matmul %311, %308, %cst_21 {dimension_numbers = #tpu.dot_dimension_numbers<[1], [0], [0], [1], [0, 0, 1, 1], [], []>} : vector<2x5xf32>, vector<5x100xf32>, vector<2x100xf32> -> vector<2x100xf32>
    %313 = vector.broadcast %309 : vector<1x100xf32> to vector<2x100xf32>
    %314 = arith.addf %312, %313 : vector<2x100xf32>
    %cst_22 = arith.constant 0.000000e+00 : f32
    %315 = vector.broadcast %cst_22 : f32 to vector<2x100xf32>
    %316 = arith.maximumf %314, %315 : vector<2x100xf32>
    %c20 = arith.constant 20 : index
    %c0_23 = arith.constant 0 : index
    %317 = vector.load %arg1[%c20, %c0_23] : memref<24x128xf32, #tpu.memory_space<vmem>>, vector<1x100xf32>
    %c21 = arith.constant 21 : index
    %c0_24 = arith.constant 0 : index
    %318 = vector.load %arg1[%c21, %c0_24] : memref<24x128xf32, #tpu.memory_space<vmem>>, vector<1x1xf32>
    %319 = vector.broadcast %317 : vector<1x100xf32> to vector<2x100xf32>
    %320 = arith.mulf %316, %319 : vector<2x100xf32>
    %cst_25 = arith.constant dense<0.000000e+00> : vector<2xf32>
    %321 = vector.multi_reduction <add>, %320, %cst_25 [1] : vector<2x100xf32> to vector<2xf32>
    %322 = vector.shape_cast %321 : vector<2xf32> to vector<2x1xf32>
    %323 = vector.broadcast %318 : vector<1x1xf32> to vector<2x1xf32>
    %324 = arith.addf %322, %323 : vector<2x1xf32>
    %c0_26 = arith.constant 0 : index
    %c0_27 = arith.constant 0 : index
    %325 = vector.load %arg2[%c0_26, %c0_27] : memref<2x1xf32, #tpu.memory_space<vmem>>, vector<2x1xf32>
    tpu.vector_store %arg2[%c0_26, %c0_27], %324 {strides = array<i32>} : memref<2x1xf32, #tpu.memory_space<vmem>>, vector<2x1xf32>,
    return
  }
}

</mosaic_0001>

<bundles_post_ra>
// kernel: _prediction_forward.1
= control target key start
LH: loop header
LB: loop body
LE: loop exit
PB: predicated region body
PF: predicated region fallthrough
CT: control target
= control target key end

     0   :  { %vm22_vm0 = vcmask 1040384   ;;  %vm15_vm1 = vcmask 72704   ;;  %vm895_vm2 = vmmov 1   ;;  %s896_s26 = smov 113   ;;  %s897_s27 = smov 5   ;;  %v898_v32 = vmov 11   ;;  %s1084_s1 = inlined_call_operand.vmem [shape: f32[24,128], index: 1, kind: input, shape index: {}]   ;;  %s1085_s0 = inlined_call_operand.vmem [shape: f32[16,9], index: 0, kind: input, shape index: {}]   ;;  %s1086_s2 = inlined_call_operand.vmem [shape: f32[2,1], index: 2, kind: output, shape index: {}]  }
   0x1   :  { %v11_v0 = vld [vmem:[%s1084_s1] sm:$0xff]  ;;  %v12_v1 = vld [vmem:[%s1084_s1 + $0x8] sm:$0x1]  ;;  %vm780_vm3 = vmpackc.low %vm22_vm0, %vm895_vm2  ;;  %797 = vset.pattern.permute.xlu0 %v898_v32  ;;  %v899_v33 = vmov 10   ;;  %v900_v37 = vmov 14   ;;  %v901_v38 = vmov 12  }
   0x2   :  { %v779_v2 = vpack.c.bf16 %v12_v1, %v11_v0  ;;  %v13_v3 = vld [vmem:[%s1085_s0] sm:$0xff]  ;;  %v14_v4 = vld [vmem:[%s1085_s0 + $0x8] sm:$0xff]  ;;  %796 = vset.pattern.permute.xlu1 %v899_v33  ;;  %v902_v39 = vmov 13   ;;  %vm643_vm4 = vcmask 1044480   ;;  %vm904_vm5 = vmmov 0   ;;  %s905_s30 = smov 118  }
   0x3   :  { %771 = vmatprep.mubr.msk.f32.mxu0 %vm15_vm1, %v13_v3  ;;  %v936_v5 = vld [vmem:[%s1084_s1 + $0xa] ss:$0 sm:$0xff]  ;;  %v941_v6 = vld [vmem:[%s1084_s1 + $0xb] ss:$0 sm:$0xff]  ;;  %v946_v7 = vld [vmem:[%s1084_s1 + $0x9] ss:$0 sm:$0xff] }
   0x4   :  { %781 = vmatprep.subr.msk.bf16.mxu0 %vm780_vm3, %v779_v2  ;;  %v951_v8 = vld [vmem:[%s1084_s1 + $0xc] ss:$0 sm:$0xff]  ;;  %v956_v9 = vld [vmem:[%s1084_s1 + $0xd] ss:$0 sm:$0xff]  ;;  %v127_v10 = vmul.f32 0.0, %v936_v5  ;;  %v128_v11 = vmul.f32 0.0, %v941_v6 }
   0x5   :  { %784 = vmatpush3.bf16.msk.msra.mxu0 %vm780_vm3, %v779_v2  ;;  %v126_v12 = vmul.f32 0.0, %v946_v7  ;;  %v129_v13 = vmul.f32 0.0, %v951_v8  ;;  %v130_v14 = vmul.f32 0.0, %v956_v9  ;;  %vm640_vm6 = vcmask 39936  }
   0x6   :  { %v132_v16 = vadd.f32 %v128_v11, %v127_v10  ;;  %vm725_vm7 = vcmask 812032   ;;  %vm734_vm8 = vcmask 1024  }
   0x7   :  { %v133_v19 = vadd.f32 %v130_v14, %v129_v13 }
   0x8   :  { %772 = vmatmul.mubr.msk.f32.vlgmr.msra.gmra.mrb[0].mxu0 %vm15_vm1, %v14_v4 }
  0xdb   :  { %v963_v15 = vpop.f32.mrb[0].mxu0 }
  0xdc   :  { %v965_v17 = vpop.f32.mrb[1].mxu0 }
  0xdd   :  { %v131_v18 = vadd.f32 %v126_v12, %v965_v17 }
  0xdf   :  { %v134_v20 = vadd.f32 %v132_v16, %v131_v18 }
  0xe1   :  { %v135_v21 = vadd.f32 %v134_v20, %v133_v19 }
  0xe3   :  { %831 = vtanh.f32 %v135_v21  ;;  %v748_v23 = vmul.f32 -1.442695, %v135_v21 }
  0xe5   :  { %833 = vpow2.f32 %v748_v23 }
  0xed   :  { %v832_v22 = vpop.eup %831 }
  0xee   :  { %145 = vrot.lane.b32.xlu0 %v832_v22, %s896_s26 }
  0xef   :  { %v834_v24 = vpop.eup %833 }
  0xf0   :  { %v139_v25 = vadd.f32 1.0, %v834_v24 }
  0xf2   :  { %835 = vrcp.f32 %v139_v25 }
  0xfc   :  { %v836_v26 = vpop.eup %835 }
  0xfd   :  { %v143_v29 = vmul.f32 0.0, %v836_v26 }
 0x160   :  { %v146_v27 = vpop.permute.xlu0 %145 }
 0x161   :  { %v148_v28 = vmul.f32 %v836_v26, %v146_v27 }
 0x163   :  { %150 = vrot.lane.b32.xlu0 %v148_v28, %s897_s27 }
 0x1d5   :  { %v151_v30 = vpop.permute.xlu0 %150 }
 0x1d6   :  { %v153_v31 = vadd.f32 %v151_v30, %v143_v29 }
 0x1d8   :  { %837 = vtanh.f32 %v153_v31  ;;  %v208_v1 = vrot.slane %v153_v31, 6 }
 0x1e2   :  { %v838_v34 = vpop.eup %837 }
 0x1e3   :  { %156 = vrot.lane.b32.xlu1 %v838_v34, %s897_s27 }
 0x255   :  { %v157_v35 = vpop.permute.xlu1 %156 }
 0x256   :  { %v159_v36 = vmul.f32 %v836_v26, %v157_v35 }
 0x258   :  { %167 = vperm.xlu0 %797, %v159_v36   ;;  %162 = vperm.xlu1 %796, %v159_v36  }
 0x25c   :  { %800 = vset.pattern.permute.xlu0 %v900_v37  ;;  %798 = vset.pattern.permute.xlu1 %v901_v38 }
 0x25d   :  { %182 = vperm.xlu0 %800, %v159_v36   ;;  %172 = vperm.xlu1 %798, %v159_v36  }
 0x261   :  { %799 = vset.pattern.permute.xlu1 %v902_v39  ;;  %802 = vset.pattern.permute.xlu0 %v898_v32 }
 0x262   :  { %177 = vperm.xlu1 %799, %v159_v36  }
 0x266   :  { %801 = vset.pattern.permute.xlu1 %v899_v33 }
 0x2d7   :  { %v163_v40 = vpop.permute.xlu1 %162  ;;  %v168_v41 = vpop.permute.xlu0 %167 }
 0x2d8   :  { %v165_v42 = vmul.f32 %v946_v7, %v163_v40  ;;  %v170_v44 = vmul.f32 %v936_v5, %v168_v41 }
 0x2da   :  { %v187_v48 = vrot.slane %v165_v42, 6 }
 0x2dc   :  { %v173_v43 = vpop.permute.xlu1 %172  ;;  %v183_v46 = vpop.permute.xlu0 %182  ;;  %v189_v53 = vadd.f32 %v187_v48, %v965_v17 }
 0x2dd   :  { %v175_v45 = vmul.f32 %v941_v6, %v173_v43  ;;  %v185_v50 = vmul.f32 %v956_v9, %v183_v46 }
 0x2df   :  { %v190_v47 = vadd.f32 %v175_v45, %v170_v44 }
 0x2e1   :  { %v178_v49 = vpop.permute.xlu1 %177  ;;  %v193_v51 = vrot.slane %v190_v47, 6 }
 0x2e2   :  { %v180_v52 = vmul.f32 %v951_v8, %v178_v49 }
 0x2e3   :  { %v195_v55 = vadd.f32 %v193_v51, %v189_v53 }
 0x2e4   :  { %v191_v54 = vadd.f32 %v185_v50, %v180_v52 }
 0x2e6   :  { %v197_v56 = vrot.slane %v191_v54, 6 }
 0x2e8   :  { %v199_v57 = vadd.f32 %v197_v56, %v195_v55 }
 0x2ea   :  { %839 = vtanh.f32 %v199_v57  ;;  %v749_v59 = vmul.f32 -1.442695, %v199_v57 }
 0x2ec   :  { %841 = vpow2.f32 %v749_v59 }
 0x2f4   :  { %v840_v58 = vpop.eup %839 }
 0x2f5   :  { %212 = vrot.lane.b32.xlu1 %v840_v58, %s896_s26 }
 0x2f6   :  { %v842_v60 = vpop.eup %841 }
 0x2f7   :  { %v203_v61 = vadd.f32 1.0, %v842_v60 }
 0x2f9   :  { %843 = vrcp.f32 %v203_v61 }
 0x303   :  { %v844_v62 = vpop.eup %843 }
 0x304   :  { %v210_v2 = vmul.f32 %v844_v62, %v208_v1 }
 0x367   :  { %v213_v63 = vpop.permute.xlu1 %212 }
 0x368   :  { %v215_v0 = vmul.f32 %v844_v62, %v213_v63 }
 0x36a   :  { %217 = vrot.lane.b32.xlu1 %v215_v0, %s897_s27 }
 0x3dc   :  { %v218_v3 = vpop.permute.xlu1 %217 }
 0x3dd   :  { %v220_v4 = vadd.f32 %v218_v3, %v210_v2 }
 0x3df   :  { %845 = vtanh.f32 %v220_v4  ;;  %v275_v45 = vrot.slane %v220_v4, 6 }
 0x3e9   :  { %v846_v10 = vpop.eup %845 }
 0x3ea   :  { %223 = vrot.lane.b32.xlu0 %v846_v10, %s897_s27 }
 0x45c   :  { %v224_v11 = vpop.permute.xlu0 %223 }
 0x45d   :  { %v226_v12 = vmul.f32 %v844_v62, %v224_v11 }
 0x45f   :  { %234 = vperm.xlu0 %802, %v226_v12   ;;  %229 = vperm.xlu1 %801, %v226_v12  }
 0x463   :  { %805 = vset.pattern.permute.xlu0 %v900_v37  ;;  %803 = vset.pattern.permute.xlu1 %v901_v38 }
 0x464   :  { %249 = vperm.xlu0 %805, %v226_v12   ;;  %239 = vperm.xlu1 %803, %v226_v12  }
 0x468   :  { %804 = vset.pattern.permute.xlu1 %v902_v39  ;;  %807 = vset.pattern.permute.xlu0 %v898_v32 }
 0x469   :  { %244 = vperm.xlu1 %804, %v226_v12  }
 0x46d   :  { %806 = vset.pattern.permute.xlu1 %v899_v33 }
 0x4de   :  { %v230_v13 = vpop.permute.xlu1 %229  ;;  %v235_v14 = vpop.permute.xlu0 %234 }
 0x4df   :  { %v232_v16 = vmul.f32 %v946_v7, %v230_v13  ;;  %v237_v19 = vmul.f32 %v936_v5, %v235_v14 }
 0x4e1   :  { %v254_v23 = vrot.slane %v232_v16, 6 }
 0x4e3   :  { %v240_v18 = vpop.permute.xlu1 %239  ;;  %v250_v21 = vpop.permute.xlu0 %249  ;;  %v256_v28 = vadd.f32 %v254_v23, %v965_v17 }
 0x4e4   :  { %v242_v20 = vmul.f32 %v941_v6, %v240_v18  ;;  %v252_v25 = vmul.f32 %v956_v9, %v250_v21 }
 0x4e6   :  { %v257_v22 = vadd.f32 %v242_v20, %v237_v19 }
 0x4e8   :  { %v245_v24 = vpop.permute.xlu1 %244  ;;  %v260_v26 = vrot.slane %v257_v22, 6 }
 0x4e9   :  { %v247_v27 = vmul.f32 %v951_v8, %v245_v24 }
 0x4ea   :  { %v262_v30 = vadd.f32 %v260_v26, %v256_v28 }
 0x4eb   :  { %v258_v29 = vadd.f32 %v252_v25, %v247_v27 }
 0x4ed   :  { %v264_v31 = vrot.slane %v258_v29, 6 }
 0x4ef   :  { %v266_v34 = vadd.f32 %v264_v31, %v262_v30 }
 0x4f1   :  { %847 = vtanh.f32 %v266_v34  ;;  %v750_v36 = vmul.f32 -1.442695, %v266_v34 }
 0x4f3   :  { %849 = vpow2.f32 %v750_v36 }
 0x4fb   :  { %v848_v35 = vpop.eup %847 }
 0x4fc   :  { %279 = vrot.lane.b32.xlu1 %v848_v35, %s896_s26 }
 0x4fd   :  { %v850_v40 = vpop.eup %849 }
 0x4fe   :  { %v270_v41 = vadd.f32 1.0, %v850_v40 }
 0x500   :  { %851 = vrcp.f32 %v270_v41 }
 0x50a   :  { %v852_v42 = vpop.eup %851 }
 0x50b   :  { %v277_v46 = vmul.f32 %v852_v42, %v275_v45 }
 0x56e   :  { %v280_v43 = vpop.permute.xlu1 %279 }
 0x56f   :  { %v282_v44 = vmul.f32 %v852_v42, %v280_v43 }
 0x571   :  { %284 = vrot.lane.b32.xlu1 %v282_v44, %s897_s27 }
 0x5e3   :  { %v285_v47 = vpop.permute.xlu1 %284 }
 0x5e4   :  { %v287_v48 = vadd.f32 %v285_v47, %v277_v46 }
 0x5e6   :  { %853 = vtanh.f32 %v287_v48  ;;  %v342_v20 = vrot.slane %v287_v48, 6 }
 0x5f0   :  { %v854_v49 = vpop.eup %853 }
 0x5f1   :  { %290 = vrot.lane.b32.xlu0 %v854_v49, %s897_s27 }
 0x663   :  { %v291_v50 = vpop.permute.xlu0 %290 }
 0x664   :  { %v293_v51 = vmul.f32 %v852_v42, %v291_v50 }
 0x666   :  { %301 = vperm.xlu0 %807, %v293_v51   ;;  %296 = vperm.xlu1 %806, %v293_v51  }
 0x66a   :  { %810 = vset.pattern.permute.xlu0 %v900_v37  ;;  %808 = vset.pattern.permute.xlu1 %v901_v38 }
 0x66b   :  { %316 = vperm.xlu0 %810, %v293_v51   ;;  %306 = vperm.xlu1 %808, %v293_v51  }
 0x66f   :  { %809 = vset.pattern.permute.xlu1 %v902_v39  ;;  %812 = vset.pattern.permute.xlu0 %v898_v32 }
 0x670   :  { %311 = vperm.xlu1 %809, %v293_v51  }
 0x674   :  { %811 = vset.pattern.permute.xlu1 %v899_v33 }
 0x6e5   :  { %v297_v52 = vpop.permute.xlu1 %296  ;;  %v302_v53 = vpop.permute.xlu0 %301 }
 0x6e6   :  { %v299_v54 = vmul.f32 %v946_v7, %v297_v52  ;;  %v304_v56 = vmul.f32 %v936_v5, %v302_v53 }
 0x6e8   :  { %v321_v60 = vrot.slane %v299_v54, 6 }
 0x6ea   :  { %v307_v55 = vpop.permute.xlu1 %306  ;;  %v317_v58 = vpop.permute.xlu0 %316  ;;  %v323_v1 = vadd.f32 %v321_v60, %v965_v17 }
 0x6eb   :  { %v309_v57 = vmul.f32 %v941_v6, %v307_v55  ;;  %v319_v62 = vmul.f32 %v956_v9, %v317_v58 }
 0x6ed   :  { %v324_v59 = vadd.f32 %v309_v57, %v304_v56 }
 0x6ef   :  { %v312_v61 = vpop.permute.xlu1 %311  ;;  %v327_v63 = vrot.slane %v324_v59, 6 }
 0x6f0   :  { %v314_v0 = vmul.f32 %v951_v8, %v312_v61 }
 0x6f1   :  { %v329_v3 = vadd.f32 %v327_v63, %v323_v1 }
 0x6f2   :  { %v325_v2 = vadd.f32 %v319_v62, %v314_v0 }
 0x6f4   :  { %v331_v4 = vrot.slane %v325_v2, 6 }
 0x6f6   :  { %v333_v10 = vadd.f32 %v331_v4, %v329_v3 }
 0x6f8   :  { %855 = vtanh.f32 %v333_v10  ;;  %v751_v12 = vmul.f32 -1.442695, %v333_v10 }
 0x6fa   :  { %857 = vpow2.f32 %v751_v12 }
 0x702   :  { %v856_v11 = vpop.eup %855 }
 0x703   :  { %346 = vrot.lane.b32.xlu1 %v856_v11, %s896_s26 }
 0x704   :  { %v858_v13 = vpop.eup %857 }
 0x705   :  { %v337_v14 = vadd.f32 1.0, %v858_v13 }
 0x707   :  { %859 = vrcp.f32 %v337_v14 }
 0x711   :  { %v860_v16 = vpop.eup %859 }
 0x712   :  { %v344_v17 = vmul.f32 %v860_v16, %v342_v20 }
 0x775   :  { %v347_v18 = vpop.permute.xlu1 %346 }
 0x776   :  { %v349_v19 = vmul.f32 %v860_v16, %v347_v18 }
 0x778   :  { %351 = vrot.lane.b32.xlu1 %v349_v19, %s897_s27 }
 0x7ea   :  { %v352_v21 = vpop.permute.xlu1 %351 }
 0x7eb   :  { %v354_v22 = vadd.f32 %v352_v21, %v344_v17 }
 0x7ed   :  { %861 = vtanh.f32 %v354_v22  ;;  %v409_v56 = vrot.slane %v354_v22, 6 }
 0x7f7   :  { %v862_v23 = vpop.eup %861 }
 0x7f8   :  { %357 = vrot.lane.b32.xlu0 %v862_v23, %s897_s27 }
 0x86a   :  { %v358_v24 = vpop.permute.xlu0 %357 }
 0x86b   :  { %v360_v25 = vmul.f32 %v860_v16, %v358_v24 }
 0x86d   :  { %368 = vperm.xlu0 %812, %v360_v25   ;;  %363 = vperm.xlu1 %811, %v360_v25  }
 0x871   :  { %815 = vset.pattern.permute.xlu0 %v900_v37  ;;  %813 = vset.pattern.permute.xlu1 %v901_v38 }
 0x872   :  { %383 = vperm.xlu0 %815, %v360_v25   ;;  %373 = vperm.xlu1 %813, %v360_v25  }
 0x876   :  { %814 = vset.pattern.permute.xlu1 %v902_v39  ;;  %817 = vset.pattern.permute.xlu0 %v898_v32 }
 0x877   :  { %378 = vperm.xlu1 %814, %v360_v25  }
 0x87b   :  { %816 = vset.pattern.permute.xlu1 %v899_v33 }
 0x8ec   :  { %v364_v26 = vpop.permute.xlu1 %363  ;;  %v369_v27 = vpop.permute.xlu0 %368 }
 0x8ed   :  { %v366_v28 = vmul.f32 %v946_v7, %v364_v26  ;;  %v371_v30 = vmul.f32 %v936_v5, %v369_v27 }
 0x8ef   :  { %v388_v36 = vrot.slane %v366_v28, 6 }
 0x8f1   :  { %v374_v29 = vpop.permute.xlu1 %373  ;;  %v384_v34 = vpop.permute.xlu0 %383  ;;  %v390_v44 = vadd.f32 %v963_v15, %v388_v36 }
 0x8f2   :  { %v376_v31 = vmul.f32 %v941_v6, %v374_v29  ;;  %v386_v41 = vmul.f32 %v956_v9, %v384_v34 }
 0x8f4   :  { %v391_v35 = vadd.f32 %v376_v31, %v371_v30 }
 0x8f6   :  { %v379_v40 = vpop.permute.xlu1 %378  ;;  %v394_v42 = vrot.slane %v391_v35, 6 }
 0x8f7   :  { %v381_v43 = vmul.f32 %v951_v8, %v379_v40 }
 0x8f8   :  { %v396_v46 = vadd.f32 %v394_v42, %v390_v44 }
 0x8f9   :  { %v392_v45 = vadd.f32 %v386_v41, %v381_v43 }
 0x8fb   :  { %v398_v47 = vrot.slane %v392_v45, 6 }
 0x8fd   :  { %v400_v48 = vadd.f32 %v398_v47, %v396_v46 }
 0x8ff   :  { %863 = vtanh.f32 %v400_v48  ;;  %v752_v50 = vmul.f32 -1.442695, %v400_v48 }
 0x901   :  { %865 = vpow2.f32 %v752_v50 }
 0x909   :  { %v864_v49 = vpop.eup %863 }
 0x90a   :  { %413 = vrot.lane.b32.xlu1 %v864_v49, %s896_s26 }
 0x90b   :  { %v866_v51 = vpop.eup %865 }
 0x90c   :  { %v404_v52 = vadd.f32 1.0, %v866_v51 }
 0x90e   :  { %867 = vrcp.f32 %v404_v52 }
 0x918   :  { %v868_v53 = vpop.eup %867 }
 0x919   :  { %v411_v57 = vmul.f32 %v868_v53, %v409_v56 }
 0x97c   :  { %v414_v54 = vpop.permute.xlu1 %413 }
 0x97d   :  { %v416_v55 = vmul.f32 %v868_v53, %v414_v54 }
 0x97f   :  { %418 = vrot.lane.b32.xlu1 %v416_v55, %s897_s27 }
 0x9f1   :  { %v419_v58 = vpop.permute.xlu1 %418 }
 0x9f2   :  { %v421_v59 = vadd.f32 %v419_v58, %v411_v57 }
 0x9f4   :  { %869 = vtanh.f32 %v421_v59  ;;  %v476_v30 = vrot.slane %v421_v59, 6 }
 0x9fe   :  { %v870_v60 = vpop.eup %869 }
 0x9ff   :  { %424 = vrot.lane.b32.xlu0 %v870_v60, %s897_s27 }
 0xa71   :  { %v425_v61 = vpop.permute.xlu0 %424 }
 0xa72   :  { %v427_v62 = vmul.f32 %v868_v53, %v425_v61 }
 0xa74   :  { %435 = vperm.xlu0 %817, %v427_v62   ;;  %430 = vperm.xlu1 %816, %v427_v62  }
 0xa78   :  { %820 = vset.pattern.permute.xlu0 %v900_v37  ;;  %818 = vset.pattern.permute.xlu1 %v901_v38 }
 0xa79   :  { %450 = vperm.xlu0 %820, %v427_v62   ;;  %440 = vperm.xlu1 %818, %v427_v62  }
 0xa7d   :  { %819 = vset.pattern.permute.xlu1 %v902_v39  ;;  %822 = vset.pattern.permute.xlu0 %v898_v32 }
 0xa7e   :  { %445 = vperm.xlu1 %819, %v427_v62  }
 0xa82   :  { %821 = vset.pattern.permute.xlu1 %v899_v33 }
 0xaf3   :  { %v431_v63 = vpop.permute.xlu1 %430  ;;  %v436_v0 = vpop.permute.xlu0 %435 }
 0xaf4   :  { %v433_v1 = vmul.f32 %v946_v7, %v431_v63  ;;  %v438_v3 = vmul.f32 %v936_v5, %v436_v0 }
 0xaf6   :  { %v455_v12 = vrot.slane %v433_v1, 6 }
 0xaf8   :  { %v441_v2 = vpop.permute.xlu1 %440  ;;  %v451_v10 = vpop.permute.xlu0 %450  ;;  %v457_v19 = vadd.f32 %v963_v15, %v455_v12 }
 0xaf9   :  { %v443_v4 = vmul.f32 %v941_v6, %v441_v2  ;;  %v453_v14 = vmul.f32 %v956_v9, %v451_v10 }
 0xafb   :  { %v458_v11 = vadd.f32 %v443_v4, %v438_v3 }
 0xafd   :  { %v446_v13 = vpop.permute.xlu1 %445  ;;  %v461_v16 = vrot.slane %v458_v11, 6 }
 0xafe   :  { %v448_v18 = vmul.f32 %v951_v8, %v446_v13 }
 0xaff   :  { %v463_v17 = vadd.f32 %v461_v16, %v457_v19 }
 0xb00   :  { %v459_v20 = vadd.f32 %v453_v14, %v448_v18 }
 0xb02   :  { %v465_v21 = vrot.slane %v459_v20, 6 }
 0xb04   :  { %v467_v22 = vadd.f32 %v465_v21, %v463_v17 }
 0xb06   :  { %871 = vtanh.f32 %v467_v22  ;;  %v753_v24 = vmul.f32 -1.442695, %v467_v22 }
 0xb08   :  { %873 = vpow2.f32 %v753_v24 }
 0xb10   :  { %v872_v23 = vpop.eup %871 }
 0xb11   :  { %480 = vrot.lane.b32.xlu1 %v872_v23, %s896_s26 }
 0xb12   :  { %v874_v25 = vpop.eup %873 }
 0xb13   :  { %v471_v26 = vadd.f32 1.0, %v874_v25 }
 0xb15   :  { %875 = vrcp.f32 %v471_v26 }
 0xb1f   :  { %v876_v27 = vpop.eup %875 }
 0xb20   :  { %v478_v31 = vmul.f32 %v876_v27, %v476_v30 }
 0xb83   :  { %v481_v28 = vpop.permute.xlu1 %480 }
 0xb84   :  { %v483_v29 = vmul.f32 %v876_v27, %v481_v28 }
 0xb86   :  { %485 = vrot.lane.b32.xlu1 %v483_v29, %s897_s27 }
 0xbf8   :  { %v486_v34 = vpop.permute.xlu1 %485 }
 0xbf9   :  { %v488_v35 = vadd.f32 %v486_v34, %v478_v31 }
 0xbfb   :  { %877 = vtanh.f32 %v488_v35  ;;  %v543_v1 = vrot.slane %v488_v35, 6 }
 0xc05   :  { %v878_v36 = vpop.eup %877 }
 0xc06   :  { %491 = vrot.lane.b32.xlu0 %v878_v36, %s897_s27  ;;  %v629_v36 = vld [vmem:[%s1084_s1 + $0xe] sm:$0x1f] }
 0xc78   :  { %v492_v40 = vpop.permute.xlu0 %491 }
 0xc79   :  { %v494_v41 = vmul.f32 %v876_v27, %v492_v40  ;;  %v903_v40 = vmov 0.0  }
 0xc7a   :  { %774 = vmatprep.subr.mxu1 %v903_v40  ;;  %776 = vmatprep.mubr.msk.f32.mxu1 %vm904_vm5, %v903_v40 }
 0xc7b   :  { %502 = vperm.xlu0 %822, %v494_v41   ;;  %497 = vperm.xlu1 %821, %v494_v41  }
 0xc7c   :  { %775 = vmatpush3.msk.msra.mxu1 %vm643_vm4, %v629_v36 }
 0xc7f   :  { %825 = vset.pattern.permute.xlu0 %v900_v37  ;;  %823 = vset.pattern.permute.xlu1 %v901_v38 }
 0xc80   :  { %517 = vperm.xlu0 %825, %v494_v41   ;;  %507 = vperm.xlu1 %823, %v494_v41  }
 0xc84   :  { %824 = vset.pattern.permute.xlu1 %v902_v39  ;;  %827 = vset.pattern.permute.xlu0 %v898_v32 }
 0xc85   :  { %512 = vperm.xlu1 %824, %v494_v41  }
 0xc89   :  { %826 = vset.pattern.permute.xlu1 %v899_v33 }
 0xcfa   :  { %v498_v42 = vpop.permute.xlu1 %497  ;;  %v503_v43 = vpop.permute.xlu0 %502 }
 0xcfb   :  { %v500_v44 = vmul.f32 %v946_v7, %v498_v42  ;;  %v505_v46 = vmul.f32 %v936_v5, %v503_v43 }
 0xcfd   :  { %v522_v50 = vrot.slane %v500_v44, 6 }
 0xcff   :  { %v508_v45 = vpop.permute.xlu1 %507  ;;  %v518_v48 = vpop.permute.xlu0 %517  ;;  %v524_v33 = vadd.f32 %v963_v15, %v522_v50 }
 0xd00   :  { %v510_v47 = vmul.f32 %v941_v6, %v508_v45  ;;  %v520_v52 = vmul.f32 %v956_v9, %v518_v48 }
 0xd02   :  { %v525_v49 = vadd.f32 %v510_v47, %v505_v46  ;;  %v756_v47 = vld [vmem:[%s1084_s1 + $0x13] ss:$0 sm:$0xff] }
 0xd04   :  { %v513_v51 = vpop.permute.xlu1 %512  ;;  %v528_v53 = vrot.slane %v525_v49, 6 }
 0xd05   :  { %v515_v32 = vmul.f32 %v951_v8, %v513_v51  ;;  %v759_v51 = vld [vmem:[%s1084_s1 + $0x14] ss:$0 sm:$0xff] }
 0xd06   :  { %v530_v55 = vadd.f32 %v528_v53, %v524_v33  ;;  %v760_v33 = vld [vmem:[%s1084_s1 + $0x15] ss:$0 sm:$0xff] }
 0xd07   :  { %v526_v54 = vadd.f32 %v520_v52, %v515_v32 }
 0xd09   :  { %v532_v56 = vrot.slane %v526_v54, 6 }
 0xd0b   :  { %v534_v57 = vadd.f32 %v532_v56, %v530_v55 }
 0xd0d   :  { %879 = vtanh.f32 %v534_v57  ;;  %v754_v59 = vmul.f32 -1.442695, %v534_v57 }
 0xd0f   :  { %881 = vpow2.f32 %v754_v59 }
 0xd17   :  { %v880_v58 = vpop.eup %879 }
 0xd18   :  { %547 = vrot.lane.b32.xlu1 %v880_v58, %s896_s26 }
 0xd19   :  { %v882_v60 = vpop.eup %881 }
 0xd1a   :  { %v538_v61 = vadd.f32 1.0, %v882_v60 }
 0xd1c   :  { %883 = vrcp.f32 %v538_v61 }
 0xd26   :  { %v884_v62 = vpop.eup %883 }
 0xd27   :  { %v545_v2 = vmul.f32 %v884_v62, %v543_v1 }
 0xd8a   :  { %v548_v63 = vpop.permute.xlu1 %547 }
 0xd8b   :  { %v550_v0 = vmul.f32 %v884_v62, %v548_v63 }
 0xd8d   :  { %552 = vrot.lane.b32.xlu1 %v550_v0, %s897_s27 }
 0xdff   :  { %v553_v3 = vpop.permute.xlu1 %552 }
 0xe00   :  { %v555_v4 = vadd.f32 %v553_v3, %v545_v2 }
 0xe02   :  { %885 = vtanh.f32 %v555_v4 }
 0xe0c   :  { %v886_v10 = vpop.eup %885 }
 0xe0d   :  { %558 = vrot.lane.b32.xlu0 %v886_v10, %s897_s27 }
 0xe7f   :  { %v559_v11 = vpop.permute.xlu0 %558 }
 0xe80   :  { %v561_v12 = vmul.f32 %v884_v62, %v559_v11 }
 0xe82   :  { %569 = vperm.xlu0 %827, %v561_v12   ;;  %564 = vperm.xlu1 %826, %v561_v12  }
 0xe86   :  { %830 = vset.pattern.permute.xlu0 %v900_v37  ;;  %828 = vset.pattern.permute.xlu1 %v901_v38 }
 0xe87   :  { %584 = vperm.xlu0 %830, %v561_v12   ;;  %574 = vperm.xlu1 %828, %v561_v12  }
 0xe8b   :  { %829 = vset.pattern.permute.xlu1 %v902_v39 }
 0xe8c   :  { %579 = vperm.xlu1 %829, %v561_v12  }
 0xf01   :  { %v565_v13 = vpop.permute.xlu1 %564  ;;  %v570_v14 = vpop.permute.xlu0 %569 }
 0xf02   :  { %v567_v16 = vmul.f32 %v946_v7, %v565_v13  ;;  %v572_v19 = vmul.f32 %v936_v5, %v570_v14 }
 0xf04   :  { %v589_v22 = vrot.slane %v567_v16, 6 }
 0xf06   :  { %v575_v18 = vpop.permute.xlu1 %574  ;;  %v585_v17 = vpop.permute.xlu0 %584  ;;  %v591_v39 = vadd.f32 %v963_v15, %v589_v22 }
 0xf07   :  { %v577_v20 = vmul.f32 %v941_v6, %v575_v18  ;;  %v587_v38 = vmul.f32 %v956_v9, %v585_v17 }
 0xf09   :  { %v592_v21 = vadd.f32 %v577_v20, %v572_v19 }
 0xf0b   :  { %v580_v37 = vpop.permute.xlu1 %579  ;;  %v595_v23 = vrot.slane %v592_v21, 6 }
 0xf0c   :  { %v582_v24 = vmul.f32 %v951_v8, %v580_v37  ;;  %v610_v8 = vrot.slane %v555_v4, 6 }
 0xf0d   :  { %v597_v26 = vadd.f32 %v595_v23, %v591_v39 }
 0xf0e   :  { %v593_v25 = vadd.f32 %v587_v38, %v582_v24 }
 0xf10   :  { %v599_v27 = vrot.slane %v593_v25, 6 }
 0xf12   :  { %v601_v7 = vadd.f32 %v599_v27, %v597_v26 }
 0xf14   :  { %887 = vtanh.f32 %v601_v7  ;;  %v755_v5 = vmul.f32 -1.442695, %v601_v7 }
 0xf16   :  { %889 = vpow2.f32 %v755_v5 }
 0xf1e   :  { %v888_v28 = vpop.eup %887 }
 0xf1f   :  { %614 = vrot.lane.b32.xlu1 %v888_v28, %s896_s26 }
 0xf20   :  { %v890_v6 = vpop.eup %889 }
 0xf21   :  { %v605_v29 = vadd.f32 1.0, %v890_v6 }
 0xf23   :  { %891 = vrcp.f32 %v605_v29 }
 0xf2d   :  { %v892_v30 = vpop.eup %891 }
 0xf2e   :  { %v612_v15 = vmul.f32 %v892_v30, %v610_v8 }
 0xf91   :  { %v615_v9 = vpop.permute.xlu1 %614 }
 0xf92   :  { %v617_v31 = vmul.f32 %v892_v30, %v615_v9 }
 0xf94   :  { %619 = vrot.lane.b32.xlu1 %v617_v31, %s897_s27 }
0x1006   :  { %v620_v34 = vpop.permute.xlu1 %619 }
0x1007   :  { %v622_v35 = vadd.f32 %v620_v34, %v612_v15 }
0x1009   :  { %893 = vtanh.f32 %v622_v35 }
0x1013   :  { %v894_v41 = vpop.eup %893 }
0x1014   :  { %625 = vrot.lane.b32.xlu0 %v894_v41, %s897_s27 }
0x1086   :  { %v626_v42 = vpop.permute.xlu0 %625 }
0x1087   :  { %v628_v43 = vmul.f32 %v892_v30, %v626_v42 }
0x1089   :  { %v631_v44 = vmax.f32 %v628_v43, 0.0 }
0x108b   :  { %v637_v45 = vrot.slane %v631_v44, 6 }
0x108d   :  { %638 = vrot.lane.b32.xlu1 %v637_v45, %s905_s30 }
0x10ff   :  { %v639_v46 = vpop.permute.xlu1 %638 }
0x1100   :  { %777 = vmatmul.mubr.msk.f32.vlgmr.msra.gmra.mrb[0].mxu1 %vm640_vm6, %v639_v46 }
0x11d3   :  { %v713_v48 = vpop.f32.mrb[0].mxu1 }
0x11d4   :  { %v714_v49 = vadd.f32 %v756_v47, %v713_v48  ;;  %v778_v50 = vpop.f32.mrb[1].mxu1 }
0x11d6   :  { %v717_v52 = vmax.f32 %v714_v49, 0.0 }
0x11d8   :  { %v724_v53 = vmul.f32 %v759_v51, %v717_v52 }
0x11da   :  { %v726_v32 = vsel %vm725_vm7, %v724_v53, 0.0 }
0x11db   :  { %727 = vadd.xlane.f32.xlu0 %v726_v32 }
0x1268   :  { %v728_v54 = vpop.xlane.xlu0 %727 }
0x1269   :  { %v733_v55 = vadd.f32 %v760_v33, %v728_v54 }
0x126b   :  { %735 = vst.msk [vmem:[%s1086_s2] sm:$0x3] %vm734_vm8, %v733_v55 }

</bundles_post_ra>
